<compile_context>
chip_gen: v5e
topology: v5e:2x2
jax: 0.10.0
libtpu: 0.0.40
codegen_flags: <defaults>
</compile_context>

<pallas_src>
import math
import functools

import jax
import jax.numpy as jnp
from jax import lax
from jax.experimental import pallas as pl
from jax.experimental.pallas import tpu as pltpu


# ---------------------------------------------------------------------------
# In-kernel helpers (value-level math on VMEM-resident operands)
# ---------------------------------------------------------------------------
def _softmax_row(s):
    s_max = jnp.max(s, axis=-1, keepdims=True)
    e = jnp.exp(s - s_max)
    return e / jnp.sum(e, axis=-1, keepdims=True)


def _attn_dot(q, keys):
    # softmax_N( sum(q * keys, -1) ):  contract hidden dim of (1,H) with (N,H)
    # directly on the MXU (no host-side transpose of keys).
    s = lax.dot_general(q, keys, (((1,), (1,)), ((), ())),
                        preferred_element_type=jnp.float32)
    return _softmax_row(s)


def _gcn(adj, w1, b1, w2, b2):
    # GCN input x = I  =>  gcn1(x, A) = A @ W1 + b1
    h = jnp.maximum(jnp.dot(adj, w1, preferred_element_type=jnp.float32) + b1, 0.0)
    # TODO(synk): nn.Dropout skipped (inference/eval semantics).
    support = jnp.dot(h, w2, preferred_element_type=jnp.float32)
    return jnp.dot(adj, support, preferred_element_type=jnp.float32) + b2


def _output_mlp(q, ctx_o, ctx_e, w1, b1, w2, b2, hidden):
    # Sequential(ReLU, Linear(3H->2H), ReLU, Linear(2H->meds)).
    # relu(cat(q,ctx_o,ctx_e)) @ W1 == relu(q)@W1[:H] + relu(ctx_o)@W1[H:2H] + relu(ctx_e)@W1[2H:]
    # (ReLU is elementwise, so it commutes with the block decomposition; slices
    #  are sublane-aligned because hidden % 8 == 0.)
    rq = jnp.maximum(q, 0.0)
    ro = jnp.maximum(ctx_o, 0.0)
    re = jnp.maximum(ctx_e, 0.0)
    h1 = (jnp.dot(rq, w1[0 * hidden:1 * hidden, :], preferred_element_type=jnp.float32)
          + jnp.dot(ro, w1[1 * hidden:2 * hidden, :], preferred_element_type=jnp.float32)
          + jnp.dot(re, w1[2 * hidden:3 * hidden, :], preferred_element_type=jnp.float32)
          + b1)
    h1 = jnp.maximum(h1, 0.0)
    return jnp.dot(h1, w2, preferred_element_type=jnp.float32) + b2


# ---------------------------------------------------------------------------
# Fused decoder kernels (one pallas_call per forward)
# ---------------------------------------------------------------------------
def _decoder_mem_kernel(adj_ref, gw1_ref, gb1_ref, gw2_ref, gb2_ref,
                        ow1_ref, ob1_ref, ow2_ref, ob2_ref,
                        q_ref, mkeys_ref, mvals_ref, o_ref,
                        *, multi_hop_count, hidden):
    emb = _gcn(adj_ref[...], gw1_ref[...], gb1_ref[...], gw2_ref[...], gb2_ref[...])
    query = q_ref[...].astype(jnp.float32)
    mkeys = mkeys_ref[...]
    mvals = mvals_ref[...]

    def hop(_, last_q):
        w = _attn_dot(last_q, mkeys)                                  # (1, n_keys)
        v = jnp.dot(w, mvals, preferred_element_type=jnp.float32)     # (1, meds)
        ctx = jnp.dot(v, emb, preferred_element_type=jnp.float32)     # (1, hidden)
        return last_q + ctx

    # PyTorch re-invokes ehr_gcn() each hop; identical in eval mode -> reuse emb.
    last_query = lax.fori_loop(0, multi_hop_count, hop, query)

    w_e = _attn_dot(query, emb)                                       # (1, meds)
    context_e = jnp.dot(w_e, emb, preferred_element_type=jnp.float32)  # (1, hidden)
    out = _output_mlp(query, last_query, context_e,
                      ow1_ref[...], ob1_ref[...], ow2_ref[...], ob2_ref[...], hidden)
    o_ref[...] = out.astype(o_ref.dtype)


def _decoder_nomem_kernel(adj_ref, gw1_ref, gb1_ref, gw2_ref, gb2_ref,
                          ow1_ref, ob1_ref, ow2_ref, ob2_ref,
                          q_ref, o_ref, *, hidden):
    emb = _gcn(adj_ref[...], gw1_ref[...], gb1_ref[...], gw2_ref[...], gb2_ref[...])
    query = q_ref[...].astype(jnp.float32)
    w_e = _attn_dot(query, emb)
    context_e = jnp.dot(w_e, emb, preferred_element_type=jnp.float32)
    out = _output_mlp(query, context_e, context_e,
                      ow1_ref[...], ob1_ref[...], ow2_ref[...], ob2_ref[...], hidden)
    o_ref[...] = out.astype(o_ref.dtype)


# ---------------------------------------------------------------------------
# Python wrappers (jitted; all operands whole-array VMEM blocks)
# ---------------------------------------------------------------------------
_PARAM_ORDER = ("adj", "gcn_w1", "gcn_b1", "gcn_w2", "gcn_b2",
                "out_w1", "out_b1", "out_w2", "out_b2")


def _param_args(params):
    # Biases fed as (1, N) rows (lane-friendly 2D layout).
    def as2d(v):
        return v.reshape(1, -1) if v.ndim == 1 else v
    return tuple(as2d(params[k]) for k in _PARAM_ORDER)


def _vmem_specs(n):
    return [pl.BlockSpec(memory_space=pltpu.MemorySpace.VMEM)] * n


@functools.partial(jax.jit, static_argnames=("multi_hop_count",))
def decoder_forward_mem(params, query, memory_keys, memory_values_multi_hot,
                        multi_hop_count=2):
    hidden = query.shape[-1]
    meds = params["adj"].shape[0]
    kernel = functools.partial(_decoder_mem_kernel,
                               multi_hop_count=multi_hop_count, hidden=hidden)
    return pl.pallas_call(
        kernel,
        out_shape=jax.ShapeDtypeStruct((1, meds), jnp.float32),
        in_specs=_vmem_specs(12),
        out_specs=pl.BlockSpec(memory_space=pltpu.MemorySpace.VMEM),
    )(*_param_args(params), query, memory_keys, memory_values_multi_hot)


@jax.jit
def decoder_forward_nomem(params, query):
    hidden = query.shape[-1]
    meds = params["adj"].shape[0]
    kernel = functools.partial(_decoder_nomem_kernel, hidden=hidden)
    return pl.pallas_call(
        kernel,
        out_shape=jax.ShapeDtypeStruct((1, meds), jnp.float32),
        in_specs=_vmem_specs(10),
        out_specs=pl.BlockSpec(memory_space=pltpu.MemorySpace.VMEM),
    )(*_param_args(params), query)


def decoder_forward(params, query, memory_keys=None, memory_values_multi_hot=None,
                    multi_hop_count=2):
    if memory_keys is None:
        return decoder_forward_nomem(params, query)
    return decoder_forward_mem(params, query, memory_keys, memory_values_multi_hot,
                               multi_hop_count=multi_hop_count)


# ---------------------------------------------------------------------------
# Pure-JAX reference (ground truth)
# ---------------------------------------------------------------------------
def _ref_linear(x, w, b=None, relu_in=False, relu_out=False):
    if relu_in:
        x = jnp.maximum(x, 0.0)
    y = jnp.dot(x, w, precision=lax.Precision.HIGHEST)
    if b is not None:
        y = y + b
    if relu_out:
        y = jnp.maximum(y, 0.0)
    return y


def _ref_attn_dot(q, keys):
    s = jnp.sum(q * keys, axis=-1)[None, :]
    return jax.nn.softmax(s, axis=1)


def decoder_forward_ref(params, query, memory_keys=None, mv_multi_hot=None,
                        multi_hop_count=2):
    a = params["adj"]
    h = _ref_linear(a, params["gcn_w1"], params["gcn_b1"], relu_out=True)
    support = _ref_linear(h, params["gcn_w2"])
    emb = _ref_linear(a, support, params["gcn_b2"])
    if memory_keys is None:
        w_e = _ref_attn_dot(query, emb)
        context_e = _ref_linear(w_e, emb)
        context_o = context_e
    else:
        last_query = query
        for _hop in range(multi_hop_count):
            attn_w = _ref_attn_dot(last_query, memory_keys)
            attn_v = _ref_linear(attn_w, mv_multi_hot)
            read_ctx = _ref_linear(attn_v, emb)
            last_query = last_query + read_ctx
        w_e = _ref_attn_dot(query, emb)
        context_e = _ref_linear(w_e, emb)
        context_o = last_query
    x = jnp.concatenate([query, context_o, context_e], axis=-1)
    h = _ref_linear(x, params["out_w1"], params["out_b1"], relu_in=True)
    return _ref_linear(h, params["out_w2"], params["out_b2"], relu_in=True)


if __name__ == "__main__":
    hidden_size = 32
    medications_count = 24     # output_size == GCN node count
    num_admissions = 5         # rows of memory_keys / memory_values
    multi_hop_count = 2

    key = jax.random.PRNGKey(0)
    ks = jax.random.split(key, 12)

    # synthetic co-occurrence graph; normalize(A + I) row-wise (as GCN.normalize)
    a_raw = (jax.random.uniform(ks[0], (medications_count, medications_count)) > 0.7
             ).astype(jnp.float32)
    a_raw = jnp.maximum(a_raw, a_raw.T)
    a = a_raw + jnp.eye(medications_count, dtype=jnp.float32)
    rowsum = a.sum(axis=1)
    r_inv = jnp.where(rowsum > 0, 1.0 / rowsum, 0.0)
    adj = a * r_inv[:, None]

    def u(k, shape, bound):
        return jax.random.uniform(k, shape, jnp.float32, minval=-bound, maxval=bound)

    sg = 1.0 / math.sqrt(hidden_size)
    params = {
        "adj": adj,
        # GraphConvolution weights stored (in, out): stdv = 1/sqrt(out_features)
        "gcn_w1": u(ks[1], (medications_count, hidden_size), sg),
        "gcn_b1": u(ks[2], (hidden_size,), sg),
        "gcn_w2": u(ks[3], (hidden_size, hidden_size), sg),
        "gcn_b2": u(ks[4], (hidden_size,), sg),
        # output layer: weights stored (in, out) so the kernel computes x @ W
        "out_w1": u(ks[5], (hidden_size * 3, hidden_size * 2), 1.0 / math.sqrt(hidden_size * 3)),
        "out_b1": u(ks[6], (hidden_size * 2,), 1.0 / math.sqrt(hidden_size * 3)),
        "out_w2": u(ks[7], (hidden_size * 2, medications_count), 1.0 / math.sqrt(hidden_size * 2)),
        "out_b2": u(ks[8], (medications_count,), 1.0 / math.sqrt(hidden_size * 2)),
    }

    query = jax.random.normal(ks[9], (1, hidden_size), jnp.float32)
    memory_keys = jax.random.normal(ks[10], (num_admissions, hidden_size), jnp.float32)
    mv_multi_hot = (jax.random.uniform(ks[11], (num_admissions, medications_count)) > 0.6
                    ).astype(jnp.float32)

    # memory path (memory_keys is not None)
    out_mem = decoder_forward(params, query, memory_keys, mv_multi_hot, multi_hop_count)
    out_mem = jax.block_until_ready(out_mem)
    # no-memory path (memory_keys is None)
    out_nomem = decoder_forward(params, query, None, None, multi_hop_count)
    out_nomem = jax.block_until_ready(out_nomem)

    ref_mem = decoder_forward_ref(params, query, memory_keys, mv_multi_hot, multi_hop_count)
    ref_nomem = decoder_forward_ref(params, query, None, None, multi_hop_count)

    assert out_mem.shape == (1, medications_count)
    assert out_nomem.shape == (1, medications_count)
    assert jnp.allclose(out_mem, ref_mem, atol=1e-4, rtol=1e-3), "memory-path mismatch"
    assert jnp.allclose(out_nomem, ref_nomem, atol=1e-4, rtol=1e-3), "no-memory-path mismatch"

    print("KERNEL_OK")
</pallas_src>

<mosaic_0001>
module attributes {stable_mosaic.version = 11 : i64} {
  func.func @_decoder_mem_kernel(%arg0: memref<24x24xf32, #tpu.memory_space<vmem>>, %arg1: memref<24x32xf32, #tpu.memory_space<vmem>>, %arg2: memref<1x32xf32, #tpu.memory_space<vmem>>, %arg3: memref<32x32xf32, #tpu.memory_space<vmem>>, %arg4: memref<1x32xf32, #tpu.memory_space<vmem>>, %arg5: memref<96x64xf32, #tpu.memory_space<vmem>>, %arg6: memref<1x64xf32, #tpu.memory_space<vmem>>, %arg7: memref<64x24xf32, #tpu.memory_space<vmem>>, %arg8: memref<1x24xf32, #tpu.memory_space<vmem>>, %arg9: memref<1x32xf32, #tpu.memory_space<vmem>>, %arg10: memref<5x32xf32, #tpu.memory_space<vmem>>, %arg11: memref<5x24xf32, #tpu.memory_space<vmem>>, %arg12: memref<1x24xf32, #tpu.memory_space<vmem>>) attributes {dimension_semantics = [], scalar_prefetch = 0 : i64, scratch_operands = 0 : i64, tpu.core_type = #tpu.core_type<tc>} {
    %c0 = arith.constant 0 : index
    %c0_0 = arith.constant 0 : index
    %0 = vector.load %arg0[%c0, %c0_0] : memref<24x24xf32, #tpu.memory_space<vmem>>, vector<24x24xf32>
    %c0_1 = arith.constant 0 : index
    %c0_2 = arith.constant 0 : index
    %1 = vector.load %arg1[%c0_1, %c0_2] : memref<24x32xf32, #tpu.memory_space<vmem>>, vector<24x32xf32>
    %c0_3 = arith.constant 0 : index
    %c0_4 = arith.constant 0 : index
    %2 = vector.load %arg2[%c0_3, %c0_4] : memref<1x32xf32, #tpu.memory_space<vmem>>, vector<1x32xf32>
    %c0_5 = arith.constant 0 : index
    %c0_6 = arith.constant 0 : index
    %3 = vector.load %arg3[%c0_5, %c0_6] : memref<32x32xf32, #tpu.memory_space<vmem>>, vector<32x32xf32>
    %c0_7 = arith.constant 0 : index
    %c0_8 = arith.constant 0 : index
    %4 = vector.load %arg4[%c0_7, %c0_8] : memref<1x32xf32, #tpu.memory_space<vmem>>, vector<1x32xf32>
    %cst = arith.constant dense<0.000000e+00> : vector<24x32xf32>
    %5 = tpu.matmul %0, %1, %cst {dimension_numbers = #tpu.dot_dimension_numbers<[1], [0], [0], [1], [0, 0, 1, 1], [], []>} : vector<24x24xf32>, vector<24x32xf32>, vector<24x32xf32> -> vector<24x32xf32>
    %6 = vector.broadcast %2 : vector<1x32xf32> to vector<24x32xf32>
    %7 = arith.addf %5, %6 : vector<24x32xf32>
    %cst_9 = arith.constant 0.000000e+00 : f32
    %8 = vector.broadcast %cst_9 : f32 to vector<24x32xf32>
    %9 = arith.maximumf %7, %8 : vector<24x32xf32>
    %cst_10 = arith.constant dense<0.000000e+00> : vector<24x32xf32>
    %10 = tpu.matmul %9, %3, %cst_10 {dimension_numbers = #tpu.dot_dimension_numbers<[1], [0], [0], [1], [0, 0, 1, 1], [], []>} : vector<24x32xf32>, vector<32x32xf32>, vector<24x32xf32> -> vector<24x32xf32>
    %cst_11 = arith.constant dense<0.000000e+00> : vector<24x32xf32>
    %11 = tpu.matmul %0, %10, %cst_11 {dimension_numbers = #tpu.dot_dimension_numbers<[1], [0], [0], [1], [0, 0, 1, 1], [], []>} : vector<24x24xf32>, vector<24x32xf32>, vector<24x32xf32> -> vector<24x32xf32>
    %12 = vector.broadcast %4 : vector<1x32xf32> to vector<24x32xf32>
    %13 = arith.addf %11, %12 : vector<24x32xf32>
    %c0_12 = arith.constant 0 : index
    %c0_13 = arith.constant 0 : index
    %14 = vector.load %arg9[%c0_12, %c0_13] : memref<1x32xf32, #tpu.memory_space<vmem>>, vector<1x32xf32>
    %c0_14 = arith.constant 0 : index
    %c0_15 = arith.constant 0 : index
    %15 = vector.load %arg10[%c0_14, %c0_15] : memref<5x32xf32, #tpu.memory_space<vmem>>, vector<5x32xf32>
    %c0_16 = arith.constant 0 : index
    %c0_17 = arith.constant 0 : index
    %16 = vector.load %arg11[%c0_16, %c0_17] : memref<5x24xf32, #tpu.memory_space<vmem>>, vector<5x24xf32>
    %c0_i32 = arith.constant 0 : i32
    %c2_i32 = arith.constant 2 : i32
    %17 = arith.addi %c0_i32, %c2_i32 : i32
    %c1_i32 = arith.constant 1 : i32
    %18 = scf.for %arg13 = %c0_i32 to %17 step %c1_i32 iter_args(%arg14 = %14) -> (vector<1x32xf32>)  : i32 {
      %cst_40 = arith.constant dense<0.000000e+00> : vector<1x5xf32>
      %54 = tpu.matmul %arg14, %15, %cst_40 {dimension_numbers = #tpu.dot_dimension_numbers<[1], [1], [0], [0], [0, 0, 1, 0], [], []>} : vector<1x32xf32>, vector<5x32xf32>, vector<1x5xf32> -> vector<1x5xf32>
      %cst_41 = arith.constant dense<0xFF800000> : vector<1xf32>
      %55 = vector.multi_reduction <maximumf>, %54, %cst_41 [1] : vector<1x5xf32> to vector<1xf32>
      %56 = vector.shape_cast %55 : vector<1xf32> to vector<1x1xf32>
      %57 = vector.broadcast %56 : vector<1x1xf32> to vector<1x5xf32>
      %58 = arith.subf %54, %57 : vector<1x5xf32>
      %59 = math.exp %58 : vector<1x5xf32>
      %cst_42 = arith.constant dense<0.000000e+00> : vector<1xf32>
      %60 = vector.multi_reduction <add>, %59, %cst_42 [1] : vector<1x5xf32> to vector<1xf32>
      %61 = vector.shape_cast %60 : vector<1xf32> to vector<1x1xf32>
      %62 = vector.broadcast %61 : vector<1x1xf32> to vector<1x5xf32>
      %63 = arith.divf %59, %62 : vector<1x5xf32>
      %cst_43 = arith.constant dense<0.000000e+00> : vector<1x24xf32>
      %64 = tpu.matmul %63, %16, %cst_43 {dimension_numbers = #tpu.dot_dimension_numbers<[1], [0], [0], [1], [0, 0, 1, 1], [], []>} : vector<1x5xf32>, vector<5x24xf32>, vector<1x24xf32> -> vector<1x24xf32>
      %cst_44 = arith.constant dense<0.000000e+00> : vector<1x32xf32>
      %65 = tpu.matmul %64, %13, %cst_44 {dimension_numbers = #tpu.dot_dimension_numbers<[1], [0], [0], [1], [0, 0, 1, 1], [], []>} : vector<1x24xf32>, vector<24x32xf32>, vector<1x32xf32> -> vector<1x32xf32>
      %66 = arith.addf %arg14, %65 : vector<1x32xf32>
      scf.yield %66 : vector<1x32xf32>
    }
    %cst_18 = arith.constant dense<0.000000e+00> : vector<1x24xf32>
    %19 = tpu.matmul %14, %13, %cst_18 {dimension_numbers = #tpu.dot_dimension_numbers<[1], [1], [0], [0], [0, 0, 1, 0], [], []>} : vector<1x32xf32>, vector<24x32xf32>, vector<1x24xf32> -> vector<1x24xf32>
    %cst_19 = arith.constant dense<0xFF800000> : vector<1xf32>
    %20 = vector.multi_reduction <maximumf>, %19, %cst_19 [1] : vector<1x24xf32> to vector<1xf32>
    %21 = vector.shape_cast %20 : vector<1xf32> to vector<1x1xf32>
    %22 = vector.broadcast %21 : vector<1x1xf32> to vector<1x24xf32>
    %23 = arith.subf %19, %22 : vector<1x24xf32>
    %24 = math.exp %23 : vector<1x24xf32>
    %cst_20 = arith.constant dense<0.000000e+00> : vector<1xf32>
    %25 = vector.multi_reduction <add>, %24, %cst_20 [1] : vector<1x24xf32> to vector<1xf32>
    %26 = vector.shape_cast %25 : vector<1xf32> to vector<1x1xf32>
    %27 = vector.broadcast %26 : vector<1x1xf32> to vector<1x24xf32>
    %28 = arith.divf %24, %27 : vector<1x24xf32>
    %cst_21 = arith.constant dense<0.000000e+00> : vector<1x32xf32>
    %29 = tpu.matmul %28, %13, %cst_21 {dimension_numbers = #tpu.dot_dimension_numbers<[1], [0], [0], [1], [0, 0, 1, 1], [], []>} : vector<1x24xf32>, vector<24x32xf32>, vector<1x32xf32> -> vector<1x32xf32>
    %c0_22 = arith.constant 0 : index
    %c0_23 = arith.constant 0 : index
    %30 = vector.load %arg5[%c0_22, %c0_23] : memref<96x64xf32, #tpu.memory_space<vmem>>, vector<96x64xf32>
    %c0_24 = arith.constant 0 : index
    %c0_25 = arith.constant 0 : index
    %31 = vector.load %arg6[%c0_24, %c0_25] : memref<1x64xf32, #tpu.memory_space<vmem>>, vector<1x64xf32>
    %c0_26 = arith.constant 0 : index
    %c0_27 = arith.constant 0 : index
    %32 = vector.load %arg7[%c0_26, %c0_27] : memref<64x24xf32, #tpu.memory_space<vmem>>, vector<64x24xf32>
    %c0_28 = arith.constant 0 : index
    %c0_29 = arith.constant 0 : index
    %33 = vector.load %arg8[%c0_28, %c0_29] : memref<1x24xf32, #tpu.memory_space<vmem>>, vector<1x24xf32>
    %cst_30 = arith.constant 0.000000e+00 : f32
    %34 = vector.broadcast %cst_30 : f32 to vector<1x32xf32>
    %35 = arith.maximumf %14, %34 : vector<1x32xf32>
    %cst_31 = arith.constant 0.000000e+00 : f32
    %36 = vector.broadcast %cst_31 : f32 to vector<1x32xf32>
    %37 = arith.maximumf %18, %36 : vector<1x32xf32>
    %cst_32 = arith.constant 0.000000e+00 : f32
    %38 = vector.broadcast %cst_32 : f32 to vector<1x32xf32>
    %39 = arith.maximumf %29, %38 : vector<1x32xf32>
    %40 = vector.extract_strided_slice %30 {offsets = [0, 0], sizes = [32, 64], strides = [1, 1]} : vector<96x64xf32> to vector<32x64xf32>
    %cst_33 = arith.constant dense<0.000000e+00> : vector<1x64xf32>
    %41 = tpu.matmul %35, %40, %cst_33 {dimension_numbers = #tpu.dot_dimension_numbers<[1], [0], [0], [1], [0, 0, 1, 1], [], []>} : vector<1x32xf32>, vector<32x64xf32>, vector<1x64xf32> -> vector<1x64xf32>
    %42 = vector.extract_strided_slice %30 {offsets = [32, 0], sizes = [32, 64], strides = [1, 1]} : vector<96x64xf32> to vector<32x64xf32>
    %cst_34 = arith.constant dense<0.000000e+00> : vector<1x64xf32>
    %43 = tpu.matmul %37, %42, %cst_34 {dimension_numbers = #tpu.dot_dimension_numbers<[1], [0], [0], [1], [0, 0, 1, 1], [], []>} : vector<1x32xf32>, vector<32x64xf32>, vector<1x64xf32> -> vector<1x64xf32>
    %44 = arith.addf %41, %43 : vector<1x64xf32>
    %45 = vector.extract_strided_slice %30 {offsets = [64, 0], sizes = [32, 64], strides = [1, 1]} : vector<96x64xf32> to vector<32x64xf32>
    %cst_35 = arith.constant dense<0.000000e+00> : vector<1x64xf32>
    %46 = tpu.matmul %39, %45, %cst_35 {dimension_numbers = #tpu.dot_dimension_numbers<[1], [0], [0], [1], [0, 0, 1, 1], [], []>} : vector<1x32xf32>, vector<32x64xf32>, vector<1x64xf32> -> vector<1x64xf32>
    %47 = arith.addf %44, %46 : vector<1x64xf32>
    %48 = arith.addf %47, %31 : vector<1x64xf32>
    %cst_36 = arith.constant 0.000000e+00 : f32
    %49 = vector.broadcast %cst_36 : f32 to vector<1x64xf32>
    %50 = arith.maximumf %48, %49 : vector<1x64xf32>
    %cst_37 = arith.constant dense<0.000000e+00> : vector<1x24xf32>
    %51 = tpu.matmul %50, %32, %cst_37 {dimension_numbers = #tpu.dot_dimension_numbers<[1], [0], [0], [1], [0, 0, 1, 1], [], []>} : vector<1x64xf32>, vector<64x24xf32>, vector<1x24xf32> -> vector<1x24xf32>
    %52 = arith.addf %51, %33 : vector<1x24xf32>
    %c0_38 = arith.constant 0 : index
    %c0_39 = arith.constant 0 : index
    %53 = vector.load %arg12[%c0_38, %c0_39] : memref<1x24xf32, #tpu.memory_space<vmem>>, vector<1x24xf32>
    tpu.vector_store %arg12[%c0_38, %c0_39], %52 {strides = array<i32>} : memref<1x24xf32, #tpu.memory_space<vmem>>, vector<1x24xf32>,
    return
  }
}

</mosaic_0001>

<bundles_post_ra>
// kernel: decoder_forward_mem.1
= control target key start
LH: loop header
LB: loop body
LE: loop exit
PB: predicated region body
PF: predicated region fallthrough
CT: control target
= control target key end

     0   :  { %17 = vsyncpa [#allocation3], 0  ;;  %vm57_vm0 = vcmask 195584   ;;  %vm96_vm1 = vcmask 261120   ;;  %s812_s0 = inlined_call_operand.vmem [shape: f32[24,24], index: 0, kind: input, shape index: {}]   ;;  %s813_s1 = inlined_call_operand.vmem [shape: f32[24,32], index: 1, kind: input, shape index: {}]   ;;  %s814_s2 = inlined_call_operand.vmem [shape: f32[1,32], index: 2, kind: input, shape index: {}]   ;;  %s815_s3 = inlined_call_operand.vmem [shape: f32[32,32], index: 3, kind: input, shape index: {}]   ;;  %s816_s4 = inlined_call_operand.vmem [shape: f32[1,32], index: 4, kind: input, shape index: {}]   ;;  %s817_s5 = inlined_call_operand.vmem [shape: f32[96,64], index: 5, kind: input, shape index: {}]   ;;  %s818_s6 = inlined_call_operand.vmem [shape: f32[1,64], index: 6, kind: input, shape index: {}]   ;;  %s819_s7 = inlined_call_operand.vmem [shape: f32[64,24], index: 7, kind: input, shape index: {}]   ;;  %s820_s8 = inlined_call_operand.vmem [shape: f32[1,24], index: 8, kind: input, shape index: {}]   ;;  %s821_s9 = inlined_call_operand.vmem [shape: f32[1,32], index: 9, kind: input, shape index: {}]   ;;  %s822_s10 = inlined_call_operand.vmem [shape: f32[5,32], index: 10, kind: input, shape index: {}]   ;;  %s823_s11 = inlined_call_operand.vmem [shape: f32[5,24], index: 11, kind: input, shape index: {}]   ;;  %s824_s12 = inlined_call_operand.hbm [shape: f32[1,24], index: 12, kind: output, shape index: {}]  }
   0x1   :  { %v47_v0 = vld [vmem:[%s813_s1 + $0x10] sm:$0xff]  ;;  %v46_v1 = vld [vmem:[%s813_s1 + $0x8] sm:$0xff]  ;;  %v45_v2 = vld [vmem:[%s813_s1] sm:$0xff] }
   0x2   :  { %80 = vmatpush.msra.mxu0 %v47_v0  ;;  %v52_v3 = vld [vmem:[%s815_s3 + $0x18] sm:$0xff]  ;;  %v42_v4 = vld [vmem:[%s812_s0] sm:$0xff]  ;;  %v43_v5 = vld [vmem:[%s812_s0 + $0x8] sm:$0xff] }
   0x3   :  { %118 = vmatpush.msra.mxu1 %v52_v3  ;;  %523 = vmatpush.msra.mxu3 %v52_v3  ;;  %v44_v6 = vld [vmem:[%s812_s0 + $0x10] sm:$0xff]  ;;  %v50_v8 = vld [vmem:[%s815_s3 + $0x8] sm:$0xff]  ;;  %v49_v9 = vld [vmem:[%s815_s3] sm:$0xff] }
   0x4   :  { %81 = vmatpush.msra.mxu0 %v46_v1  ;;  %v51_v7 = vld [vmem:[%s815_s3 + $0x10] sm:$0xff]  ;;  %v544_v10 = vld [vmem:[%s814_s2] ss:$0 sm:$0xff] }
   0x5   :  { %119 = vmatpush.msra.mxu1 %v51_v7  ;;  %524 = vmatpush.msra.mxu3 %v51_v7  ;;  %v707_v23 = vld [vmem:[%s821_s9] sm:$0x1]   ;;  %s719_s9 = smov 0  }
   0x6   :  { %82 = vmatpush.msra.mxu0 %v45_v2  ;;  %v162_v24 = vld [vmem:[%s822_s10] sm:$0x1f]  ;;  %v588_v33 = vmov %v707_v23  }
   0x7   :  { %500 = vmatmul.msk.f32.vlgmr.msra.gmra.mxu0 %vm57_vm0, %v42_v4  ;;  %120 = vmatpush.msra.mxu1 %v50_v8  ;;  %v163_v25 = vld [vmem:[%s823_s11] sm:$0x1f] }
   0x8   :  { %525 = vmatpush.msra.mxu3 %v50_v8  ;;  %v545_v26 = vld [vmem:[%s816_s4] ss:$0 sm:$0xff] }
   0x9   :  { %121 = vmatpush.msra.mxu1 %v49_v9 }
   0xa   :  { %526 = vmatpush.msra.mxu3 %v49_v9 }
   0xf   :  { %501 = vmatmul.msk.f32.gmra.mxu0 %vm57_vm0, %v43_v5 }
  0x17   :  { %502 = vmatmul.msk.f32.gmra.mxu0 %vm57_vm0, %v44_v6 }
  0x84   :  { %v84_v11 = vpop.f32.mrf.mxu0 }
  0x85   :  { %v85_v12 = vadd.f32 %v544_v10, %v84_v11 }
  0x87   :  { %v93_v13 = vmax.f32 %v85_v12, 0.0 }
  0x89   :  { %503 = vmatmul.msk.f32.vlgmr.msra.gmra.mxu1 %vm96_vm1, %v93_v13 }
  0x8c   :  { %v87_v14 = vpop.f32.mrf.mxu0 }
  0x8d   :  { %v88_v15 = vadd.f32 %v544_v10, %v87_v14 }
  0x8f   :  { %v94_v16 = vmax.f32 %v88_v15, 0.0 }
  0x91   :  { %504 = vmatmul.msk.f32.vlgmr.msra.gmra.mxu3 %vm96_vm1, %v94_v16 }
  0x94   :  { %v90_v17 = vpop.f32.mrf.mxu0 }
  0x95   :  { %v91_v18 = vadd.f32 %v544_v10, %v90_v17 }
  0x97   :  { %v95_v19 = vmax.f32 %v91_v18, 0.0 }
  0x99   :  { %505 = vmatmul.msk.f32.gmra.mxu3 %vm96_vm1, %v95_v19 }
 0x106   :  { %v123_v22 = vpop.f32.mrf.mxu1 }
 0x114   :  { %v126_v20 = vpop.f32.mrf.mxu3 }
 0x11c   :  { %v129_v21 = vpop.f32.mrf.mxu3 }
 0x11d   :  { %148 = vmatpush.msra.mxu2 %v129_v21 }
 0x11f   :  { %149 = vmatpush.msra.mxu2 %v126_v20 }
 0x121   :  { %150 = vmatpush.msra.mxu2 %v123_v22 }
 0x122   :  { %506 = vmatmul.msk.f32.vlgmr.msra.gmra.mxu2 %vm57_vm0, %v42_v4 }
 0x12a   :  { %507 = vmatmul.msk.f32.gmra.mxu2 %vm57_vm0, %v43_v5 }
 0x132   :  { %508 = vmatmul.msk.f32.gmra.mxu2 %vm57_vm0, %v44_v6 }
 0x1a5   :  { %v152_v27 = vpop.f32.mrf.mxu2 }
 0x1a6   :  { %v153_v28 = vadd.f32 %v545_v26, %v152_v27 }
 0x1ad   :  { %v155_v29 = vpop.f32.mrf.mxu2 }
 0x1ae   :  { %v156_v30 = vadd.f32 %v545_v26, %v155_v29 }
 0x1b5   :  { %v158_v31 = vpop.f32.mrf.mxu2 }
 0x1b6   :  { %v159_v32 = vadd.f32 %v545_v26, %v158_v31 }
 0x1b7 LB: > { %509 = vmatpush.xpose.msk.msra.mxu0 %vm96_vm1, %v162_v24  ;;  %vm197_vm2 = vcmask 32768   ;;  %vm226_vm3 = vcmask 1044480   ;;  %vm222_vm8 = vcmask 39936   ;;  %s169_s9 = sadd.s32 1, %s594_s9   ;;  %s594_s9 = sphi %s719_s9, %s169_s9   ;;  %v590_v33 = vphi %v588_v33, %v589_v33  }
 0x1b8   : > { %266 = vmatpush.msra.mxu2 %v159_v32  ;;  %511 = vmatpush.msk.msra.mxu1 %vm226_vm3, %v163_v25  ;;  %p166_p0 = scmp.ge.s32.totalorder %s169_s9, 2  }
 0x1b9   :  { %vm306_vm9 = vcmask (%p166_p0), 188416   ;;  %v361_v63 = vld [vmem:[%s817_s5 + $0x38] sm:$0xff] (%p166_p0)  ;;  %v360_v0 = vld [vmem:[%s817_s5 + $0x30] sm:$0xff] (%p166_p0)  ;;  %v359_v1 = vld [vmem:[%s817_s5 + $0x28] sm:$0xff] (%p166_p0)  ;;  %v376_v12 = vmax.f32 (%p166_p0), %v707_v23, 0.0  ;;  %vm451_vm14 = vcmask (%p166_p0), 523264  }
 0x1ba   : > { %267 = vmatpush.msra.mxu2 %v156_v30  ;;  %510 = vmatmul.msk.f32.vlgmr.msra.gmra.mxu0 %vm96_vm1, %v590_v33  ;;  %v365_v2 = vld [vmem:[%s817_s5 + $0x58] sm:$0xff] (%p166_p0)  ;;  %v364_v3 = vld [vmem:[%s817_s5 + $0x50] sm:$0xff] (%p166_p0)  ;;  %v358_v4 = vld [vmem:[%s817_s5 + $0x20] sm:$0xff] (%p166_p0)  ;;  %s596_s2 = smov (%p166_p0), [#allocation2]   ;;  %s483_s24 = sshll.u32 (%p166_p0), %s824_s12, 4  ;;  %s484_s24 = int_to_ptr.hbm [resolvable:$true] %s483_s24 }
 0x1bb   :  { %514 = vmatpush.xpose.msk.msra.mxu0 (%p166_p0), %vm96_vm1, %v159_v32  ;;  %394 = vmatpush.msra.mxu3 (%p166_p0), %v361_v63  ;;  %v363_v6 = vld [vmem:[%s817_s5 + $0x48] sm:$0xff] (%p166_p0)  ;;  %v357_v7 = vld [vmem:[%s817_s5 + $0x18] sm:$0xff] (%p166_p0)  ;;  %v356_v8 = vld [vmem:[%s817_s5 + $0x10] sm:$0xff] (%p166_p0) }
 0x1bc   : > { %268 = vmatpush.msra.mxu2 %v153_v28  ;;  %v355_v9 = vld [vmem:[%s817_s5 + $0x8] sm:$0xff] (%p166_p0)  ;;  %v354_v11 = vld [vmem:[%s817_s5] sm:$0xff] (%p166_p0)  ;;  %v374_v25 = vld [vmem:[%s819_s7 + $0x38] sm:$0xff] (%p166_p0) }
 0x1bd   :  { %395 = vmatpush.msra.mxu3 (%p166_p0), %v360_v0  ;;  %v362_v24 = vld [vmem:[%s817_s5 + $0x40] sm:$0xff] (%p166_p0)  ;;  %v373_v26 = vld [vmem:[%s819_s7 + $0x30] sm:$0xff] (%p166_p0)  ;;  %v372_v27 = vld [vmem:[%s819_s7 + $0x28] sm:$0xff] (%p166_p0) }
 0x1be   :  { %v370_v31 = vld [vmem:[%s819_s7 + $0x18] sm:$0xff] (%p166_p0) }
 0x1bf   :  { %515 = vmatpush.xpose.msk.msra.mxu0 (%p166_p0), %vm96_vm1, %v156_v30  ;;  %396 = vmatpush.msra.mxu3 (%p166_p0), %v359_v1 }
 0x1c1   :  { %397 = vmatpush.msra.mxu3 (%p166_p0), %v358_v4 }
 0x1c3   :  { %516 = vmatpush.xpose.msk.msra.mxu0 (%p166_p0), %vm96_vm1, %v153_v28  ;;  %417 = vmatpush.msrb.mxu3 (%p166_p0), %v357_v7 }
 0x1c5   :  { %418 = vmatpush.msrb.mxu3 (%p166_p0), %v356_v8 }
 0x1c6   :  { %517 = vmatmul.msk.f32.vlgmr.msra.gmra.mxu0 (%p166_p0), %vm96_vm1, %v707_v23 }
 0x1c7   :  { %419 = vmatpush.msrb.mxu3 (%p166_p0), %v355_v9 }
 0x1c9   :  { %420 = vmatpush.msrb.mxu3 (%p166_p0), %v354_v11 }
 0x237   : > { %v194_v34 = vpop.f32.mrf.mxu0 }
 0x238   : > { %v198_v35 = vsel %vm197_vm2, %v194_v34, -inf }
 0x239   : > { %199 = vmax.xlane.f32.xlu0 %v198_v35 }
 0x243   :  { %v303_v56 = vpop.f32.mrf.mxu0 (%p166_p0) }
 0x244   :  { %v307_v57 = vsel (%p166_p0), %vm306_vm9, %v303_v56, -inf }
 0x2ac   : > { %v200_v36 = vpop.xlane.xlu0 %199 }
 0x2ad   : > { %v201_v37 = vsub.f32 %v194_v34, %v200_v36  ;;  %v367_v34 = vld [vmem:[%s819_s7] sm:$0xff] (%p166_p0) }
 0x2af   : > { %v202_v38 = vmul.f32 1.442695, %v201_v37 }
 0x2b1   : > { %546 = vpow2.f32 %v202_v38  ;;  %v366_v38 = vld [vmem:[%s818_s6] sm:$0x1] (%p166_p0) }
 0x2b7   : > { %v547_v39 = vpop.eup %546 }
 0x2b8   : > { %v204_v40 = vsel %vm197_vm2, %v547_v39, 0.0 }
 0x2b9   : > { %205 = vadd.xlane.f32.xlu0 %v204_v40 }
 0x2c1   :  { %308 = vmax.xlane.f32.xlu0 (%p166_p0), %v307_v57 }
 0x32c   : > { %v206_v41 = vpop.xlane.xlu0 %205 }
 0x32d   : > { %548 = vrcp.f32 %v206_v41  ;;  %v218_v45 = vand.u32 2147483648, %v206_v41  ;;  %v216_v47 = vand.u32 2147483647, %v206_v41  ;;  %vm212_vm5 = vweird.f32 %v206_v41 }
 0x32f   : > { %v219_v49 = vor.u32 1.1754944e-38, %v218_v45  ;;  %vm217_vm7 = vcmp.eq.f32.partialorder %v216_v47, 8.507059e+37 }
 0x333   : > { %v549_v42 = vpop.eup %548 }
 0x334   : > { %v208_v43 = vmul.f32 %v549_v42, %v206_v41  ;;  %vm213_vm4 = vweird.f32 %v549_v42  ;;  %v309_v58 = vpop.xlane.xlu0 (%p166_p0), %308 }
 0x335   : > { %vm214_vm6 = vmor %vm212_vm5, %vm213_vm4  ;;  %v310_v59 = vsub.f32 (%p166_p0), %v303_v56, %v309_v58 }
 0x336   : > { %v209_v44 = vsub.f32 1.0, %v208_v43  ;;  %v375_v43 = vld [vmem:[%s820_s8] sm:$0x1] (%p166_p0) }
 0x337   :  { %v311_v60 = vmul.f32 (%p166_p0), 1.442695, %v310_v59 }
 0x338   : > { %v210_v46 = vmul.f32 %v549_v42, %v209_v44 }
 0x339   :  { %550 = vpow2.f32 (%p166_p0), %v311_v60 }
 0x33a   : > { %v211_v48 = vadd.f32 %v549_v42, %v210_v46 }
 0x33c   : > { %v215_v50 = vsel %vm214_vm6, %v549_v42, %v211_v48 }
 0x33d   : > { %v220_v51 = vsel %vm217_vm7, %v219_v49, %v215_v50 }
 0x33e   : > { %v221_v52 = vmul.f32 %v547_v39, %v220_v51 }
 0x33f   :  { %v551_v61 = vpop.eup (%p166_p0), %550 }
 0x340   : > { %512 = vmatmul.msk.f32.vlgmr.msra.gmra.mxu1 %vm222_vm8, %v221_v52  ;;  %v313_v62 = vsel (%p166_p0), %vm306_vm9, %v551_v61, 0.0 }
 0x341   :  { %347 = vmatpush.msra.mxu1 (%p166_p0), %v159_v32  ;;  %314 = vadd.xlane.f32.xlu0 (%p166_p0), %v313_v62  ;;  %v369_v32 = vld [vmem:[%s819_s7 + $0x10] sm:$0xff] (%p166_p0) }
 0x343   :  { %348 = vmatpush.msra.mxu1 (%p166_p0), %v156_v30 }
 0x345   :  { %349 = vmatpush.msra.mxu1 (%p166_p0), %v153_v28  ;;  %v371_v28 = vld [vmem:[%s819_s7 + $0x20] sm:$0xff] (%p166_p0) }
 0x347   :  { %440 = vmatpush.msrb.mxu1 (%p166_p0), %v365_v2 }
 0x349   :  { %441 = vmatpush.msrb.mxu1 (%p166_p0), %v364_v3 }
 0x34b   :  { %442 = vmatpush.msrb.mxu1 (%p166_p0), %v363_v6 }
 0x34d   :  { %443 = vmatpush.msrb.mxu1 (%p166_p0), %v362_v24 }
 0x3b4   :  { %v315_v10 = vpop.xlane.xlu0 (%p166_p0), %314 }
 0x3b5   :  { %552 = vrcp.f32 (%p166_p0), %v315_v10  ;;  %v327_v16 = vand.u32 (%p166_p0), 2147483648, %v315_v10  ;;  %v325_v18 = vand.u32 (%p166_p0), 2147483647, %v315_v10  ;;  %vm321_vm11 = vweird.f32 (%p166_p0), %v315_v10 }
 0x3b7   :  { %v328_v20 = vor.u32 (%p166_p0), 1.1754944e-38, %v327_v16  ;;  %vm326_vm13 = vcmp.eq.f32.partialorder (%p166_p0), %v325_v18, 8.507059e+37 }
 0x3bb   :  { %v553_v13 = vpop.eup (%p166_p0), %552 }
 0x3bc   :  { %v317_v14 = vmul.f32 (%p166_p0), %v553_v13, %v315_v10  ;;  %vm322_vm10 = vweird.f32 (%p166_p0), %v553_v13 }
 0x3bd   : > { %v247_v53 = vpop.f32.mrf.mxu1  ;;  %vm323_vm12 = vmor (%p166_p0), %vm321_vm11, %vm322_vm10 }
 0x3be   : > { %513 = vmatmul.msk.f32.vlgmr.msra.gmra.mxu2 %vm57_vm0, %v247_v53  ;;  %v318_v15 = vsub.f32 (%p166_p0), 1.0, %v317_v14 }
 0x3bf   :  { %463 = vmatpush.msra.mxu2 (%p166_p0), %v374_v25 }
 0x3c0   :  { %v319_v17 = vmul.f32 (%p166_p0), %v553_v13, %v318_v15 }
 0x3c1   :  { %464 = vmatpush.msra.mxu2 (%p166_p0), %v373_v26 }
 0x3c2   :  { %v320_v19 = vadd.f32 (%p166_p0), %v553_v13, %v319_v17 }
 0x3c3   :  { %465 = vmatpush.msra.mxu2 (%p166_p0), %v372_v27 }
 0x3c4   :  { %v324_v21 = vsel (%p166_p0), %vm323_vm12, %v553_v13, %v320_v19 }
 0x3c5   :  { %v329_v22 = vsel (%p166_p0), %vm326_vm13, %v328_v20, %v324_v21  ;;  %466 = vmatpush.msra.mxu2 (%p166_p0), %v371_v28 }
 0x3c6   :  { %v330_v23 = vmul.f32 (%p166_p0), %v551_v61, %v329_v22 }
 0x3c7   :  { %467 = vmatpush.msra.mxu2 (%p166_p0), %v370_v31 }
 0x3c8   :  { %518 = vmatmul.msk.f32.vlgmr.msra.gmra.mxu1 (%p166_p0), %vm57_vm0, %v330_v23 }
 0x3c9   :  { %468 = vmatpush.msra.mxu2 (%p166_p0), %v369_v32 }
 0x440   :  { %168 = sbr.rel (!%p166_p0) target bundleno = 439 (0x1b7), region = 75 }
 0x441   : > { %v270_v54 = vpop.f32.mrf.mxu2 }
 0x442   : > { %v273_v55 = vadd.f32 %v590_v33, %v270_v54  }
 0x444   : > { %v589_v33 = vmov %v273_v55   ;;  %v377_v5 = vmax.f32 (%p166_p0), %v273_v55, 0.0 }
 0x445   :  { %v351_v29 = vpop.f32.mrf.mxu1  ;;  %v368_v33 = vld [vmem:[%s819_s7 + $0x8] sm:$0xff]  ;;  %s481_s7 = sshll.u32 %s596_s2, 4  ;;  %s482_s7 = int_to_ptr.vmem [resolvable:$true] %s481_s7 }
 0x446   :  { %519 = vmatmul.msk.f32.vlgmr.msra.gmra.mxu3 %vm96_vm1, %v377_v5  ;;  %v378_v30 = vmax.f32 %v351_v29, 0.0  ;;  %469 = vmatpush.msra.mxu2 %v368_v33 }
 0x448   :  { %521 = vmatmul.msk.f32.vlgmr.msrb.gmra.mxu1 %vm96_vm1, %v378_v30  ;;  %470 = vmatpush.msra.mxu2 %v367_v34 }
 0x44e   :  { %520 = vmatmul.msk.f32.vlgmr.msrb.gmra.mxu3 %vm96_vm1, %v376_v12 }
 0x4c5   :  { %v445_v39 = vpop.f32.mrf.mxu1 }
 0x4c9   :  { %v399_v35 = vpop.f32.mrf.mxu3 }
 0x4d1   :  { %v422_v36 = vpop.f32.mrf.mxu3 }
 0x4d2   :  { %v423_v37 = vadd.f32 %v422_v36, %v399_v35 }
 0x4d4   :  { %v448_v40 = vadd.f32 %v445_v39, %v423_v37 }
 0x4d6   :  { %v449_v41 = vadd.f32 %v448_v40, %v366_v38 }
 0x4d8   :  { %v450_v42 = vmax.f32 %v449_v41, 0.0 }
 0x4da   :  { %522 = vmatmul.msk.f32.vlgmr.msra.gmra.mxu2 %vm451_vm14, %v450_v42 }
 0x55d   :  { %v472_v44 = vpop.f32.mrf.mxu2 }
 0x55e   :  { %v473_v45 = vadd.f32 %v472_v44, %v375_v43 }
 0x560   :  { %475 = vst.msk [vmem:[#allocation2] sm:$0x1] %vm306_vm9, %v473_v45 }
 0x561   :  { %486 = dma.vmem_to_hbm [thread:$0]  %s482_s7, 16, %s484_s24, [#allocation3]  }
 0x562   :  { %586 = dma.done.wait [#allocation3], 16  }
 0x563   :  { %587 = vsyncadd [#allocation3], 4294967280 }
 0x564   :  { %491 = vsyncpa [#allocation3], 1 }

</bundles_post_ra>
